<compile_context>
chip_gen: v6e
topology: v6e:2x2x1
jax: 0.10.0
libtpu: 0.0.40
codegen_flags: <defaults>
</compile_context>

<pallas_src>
import functools

import jax
import jax.numpy as jnp
from jax.experimental import pallas as pl
from jax.experimental.pallas import tpu as pltpu

# VP-SDE linear beta schedule: beta(t) = BETA_MIN + (BETA_MAX - BETA_MIN) * t / T1
BETA_MIN = 0.1
BETA_MAX = 20.0
T1 = 1.0


def beta_integral(i):
    """Integral of the linear VP-SDE beta schedule: int_0^i beta(t) dt."""
    return BETA_MIN * i + 0.5 * (BETA_MAX - BETA_MIN) * (i * i) / T1


# --------------------------------------------------------------------------- #
# Kernel: one fused step  noise = L @ ng (optional);  y = x*alpha + std*noise.
# Block layouts (leading block dim is 1 whenever use_L, so the matmul needs no
# in-kernel transpose):
#   x, ng, y[, noise] : (bt, S_eff, dt)
#   L                 : (S, S)                         (only when use_L)
#   alpha, std        : (bt, 1, 1) or (1, 1, dt)       (broadcast against block)
# --------------------------------------------------------------------------- #
def _diffusion_kernel(*refs, use_L, need_noise_out):
    it = iter(refs)
    x_ref = next(it)
    ng_ref = next(it)
    L_ref = next(it) if use_L else None
    a_ref = next(it)
    s_ref = next(it)
    y_ref = next(it)
    n_ref = next(it) if need_noise_out else None

    if use_L:
        Lm = L_ref[...]                                # (S, S), loaded once per step
        ng = ng_ref[0].astype(Lm.dtype)                # (S, dt); wrapper fixed L dtype
        noise = jnp.dot(Lm, ng, preferred_element_type=jnp.float32)[None]
    else:
        noise = ng_ref[...].astype(jnp.float32)

    y = x_ref[...].astype(jnp.float32) * a_ref[...] + s_ref[...] * noise
    y_ref[...] = y.astype(y_ref.dtype)
    if need_noise_out:
        n_ref[...] = noise.astype(n_ref.dtype)


# --------------------------------------------------------------------------- #
# Block / VMEM budgeting helpers
# --------------------------------------------------------------------------- #
def _vmem_capacity_bytes():
    try:
        return int(pltpu.get_tpu_info().vmem_capacity_bytes)
    except Exception:
        return 64 << 20                # conservative: v7x per-TensorCore VMEM


def _lane_tile_options(n):
    """Valid lane tiles: multiples of 128 dividing n, else only the full dim."""
    opts = [d for d in range(128, n + 1, 128) if n % d == 0]
    return opts if opts else [n]


def _pick_tiles(B, S, D, itemsize, target_bytes, *, max_bt, min_steps):
    """Largest (bt, dt) tiles fitting target_bytes; grow batch before tiling lanes."""
    d_opts = _lane_tile_options(D)
    b_opts = [b for b in range(1, min(B, max_bt) + 1) if B % b == 0]
    bytes_of = lambda b, d: b * S * d * itemsize

    bt, dt, grown = 1, d_opts[0], False
    for cand in b_opts:                            # grow batch tile at full lane width
        if bytes_of(cand, d_opts[-1]) <= target_bytes:
            bt, dt, grown = cand, d_opts[-1], True
    if not grown:                                  # tile lanes (largest that fits)
        fitting = [d for d in d_opts if bytes_of(1, d) <= target_bytes]
        bt, dt = 1, (max(fitting) if fitting else d_opts[0])

    steps = lambda b, d: (B // b) * (D // d)
    if steps(bt, dt) < min_steps:                  # feed every TensorCore (v7x)
        for cand in reversed(b_opts):
            if cand < bt and steps(cand, dt) >= min_steps:
                bt = cand
                break
    if steps(bt, dt) < min_steps:                  # never shrink below 256 lanes
        for cand in reversed(d_opts):
            if cand < dt and cand >= 256 and steps(bt, cand) >= min_steps:
                dt = cand
                break
    return bt, dt


# --------------------------------------------------------------------------- #
# Wrapper
# --------------------------------------------------------------------------- #
def continuous_diffusion_forward(
        x, i, noise_gaussian, L=None, *,
        is_time_series=True,
        predict_gaussian_noise=True,
        matmul_in_bf16=False,
        noise_out_dtype=None,
        beta_integral_fn=beta_integral,
        max_block_bytes=8 << 20):
    """ContinuousDiffusion.forward.

    x, noise_gaussian : [B, S, D].  noise_gaussian == torch.randn_like(x), sampled
                        by the caller so the kernel is deterministic.
    i                 : per-batch diffusion time, shape (B,), (B,1), (B,1,1) or
                        (B,S,1) with one value per batch (what get_loss produces).
    L                 : [S, S] Cholesky factor of the time-series noise covariance.

    Returns (y, noise_gaussian) if predict_gaussian_noise else (y, L @ noise_gaussian).
    """
    B, S, D = x.shape

    i_arr = jnp.asarray(i, dtype=jnp.float32)
    if i_arr.ndim == 0:
        i_flat = jnp.broadcast_to(i_arr, (B,))
    else:
        if i_arr.shape[0] != B:
            raise ValueError(f"i leading dim must be the batch ({B}); got {i_arr.shape}")
        # TODO(synk): diffusion time that genuinely varies along the sequence axis
        # would need a (B, S) alpha/std input path; get_loss() always broadcasts one
        # t per batch, so we collapse to a per-batch scalar here.
        i_flat = jnp.reshape(i_arr, (B, -1))[:, 0]

    # Per-batch alpha/std: B scalars, computed once wrapper-side (EUP work in the
    # kernel would just be filler; the broadcast multiply still happens in-kernel).
    beta_int = beta_integral_fn(i_flat)
    alpha = jnp.exp(-0.5 * beta_int).astype(jnp.float32)
    std = jnp.sqrt(jnp.maximum(1.0 - jnp.exp(-beta_int), 1e-5)).astype(jnp.float32)

    use_L = bool(is_time_series)
    need_noise_out = use_L and (not predict_gaussian_noise)
    xdt = x.dtype
    ng = noise_gaussian.astype(xdt)
    itemsize = jnp.dtype(xdt).itemsize

    L_used, L_bytes = None, 0
    if use_L:
        if L is None:
            raise ValueError("is_time_series=True requires the Cholesky factor L")
        # Pre-cast L in the wrapper: no per-step S^2 VPU casts, half the VMEM/HBM
        # footprint when running the MXU in bf16 (note: bf16 loosens numerics).
        L_used = L.astype(jnp.bfloat16 if matmul_in_bf16 else jnp.float32)
        L_bytes = S * S * jnp.dtype(L_used.dtype).itemsize
        if noise_out_dtype is None:
            noise_out_dtype = jnp.promote_types(xdt, jnp.float32)  # matches torch L@noise

    # ---- generation-aware block / VMEM budgeting ---------------------------------
    vmem_cap = _vmem_capacity_bytes()
    # v7x reports ~64 MiB per TensorCore (2 TCs/chip); v5e/v6e report 128 MiB (1 TC).
    n_cores = 2 if vmem_cap <= (96 << 20) else 1
    n_streams = 3 + int(need_noise_out)            # x, ng, y [, noise], double-buffered
    usable = max(int(0.6 * vmem_cap) - 2 * L_bytes - (4 << 20), 1 << 20)
    target_block = max(min(usable // (n_streams * 2), max_block_bytes), 256 << 10)

    # ---- layout selection ----------------------------------------------------------
    if not use_L:
        # Elementwise path: free reshape to a lane-dense [B, 1, S*D] view.
        M = S * D
        x_in = x.reshape(B, 1, M)
        ng_in = ng.reshape(B, 1, M)
        bt, tm = _pick_tiles(B, 1, M, itemsize, target_block,
                             max_bt=B, min_steps=n_cores)
        grid = (B // bt, M // tm)
        data_spec = pl.BlockSpec((bt, 1, tm), lambda b, m: (b, 0, m))
        scale_spec = pl.BlockSpec((bt, 1, 1), lambda b, m: (b, 0, 0))
        in_specs = [data_spec, data_spec, scale_spec, scale_spec]
        inputs = [x_in, ng_in, alpha.reshape(B, 1, 1), std.reshape(B, 1, 1)]
        out_specs = [data_spec]
        out_shapes = [jax.ShapeDtypeStruct((B, 1, M), xdt)]
        dims = ("parallel", "parallel")
        block_elems = bt * tm
        unpack = lambda outs: (outs[0].reshape(B, S, D), None)

    elif D % 128 == 0:
        # Time-series, D already lane-dense: keep [B,S,D]; one (S,S)@(S,dt) MXU
        # matmul per (batch, feature-tile) grid step, output stores unmasked.
        _, dt = _pick_tiles(1, S, D, itemsize, target_block,
                            max_bt=1, min_steps=max(1, -(-n_cores // B)))
        grid = (B, D // dt)
        data_spec = pl.BlockSpec((1, S, dt), lambda b, d: (b, 0, d))
        L_spec = pl.BlockSpec((S, S), lambda b, d: (0, 0))
        scale_spec = pl.BlockSpec((1, 1, 1), lambda b, d: (b, 0, 0))
        in_specs = [data_spec, data_spec, L_spec, scale_spec, scale_spec]
        inputs = [x, ng, L_used, alpha.reshape(B, 1, 1), std.reshape(B, 1, 1)]
        out_specs = [data_spec]
        out_shapes = [jax.ShapeDtypeStruct((B, S, D), xdt)]
        if need_noise_out:
            out_specs.append(data_spec)
            out_shapes.append(jax.ShapeDtypeStruct((B, S, D), noise_out_dtype))
        dims = ("parallel", "parallel")
        block_elems = S * dt
        unpack = lambda outs: (outs[0], outs[1] if need_noise_out else None)

    else:
        # Time-series, small/awkward D: wrapper transposes to [1, S, B*D] so the
        # output lane axis is B*D-dense (avoids masked vst.msk partial stores --
        # the biggest single measured lever). The transpose is layout plumbing.
        N = B * D
        x_in = jnp.transpose(x, (1, 0, 2)).reshape(1, S, N)
        ng_in = jnp.transpose(ng, (1, 0, 2)).reshape(1, S, N)
        a_in = jnp.repeat(alpha, D).reshape(1, 1, N)   # lane n -> batch n // D
        s_in = jnp.repeat(std, D).reshape(1, 1, N)
        _, tn = _pick_tiles(1, S, N, itemsize, target_block,
                            max_bt=1, min_steps=n_cores)
        grid = (N // tn,)
        data_spec = pl.BlockSpec((1, S, tn), lambda n: (0, 0, n))
        L_spec = pl.BlockSpec((S, S), lambda n: (0, 0))
        scale_spec = pl.BlockSpec((1, 1, tn), lambda n: (0, 0, n))
        in_specs = [data_spec, data_spec, L_spec, scale_spec, scale_spec]
        inputs = [x_in, ng_in, L_used, a_in, s_in]
        out_specs = [data_spec]
        out_shapes = [jax.ShapeDtypeStruct((1, S, N), xdt)]
        if need_noise_out:
            out_specs.append(data_spec)
            out_shapes.append(jax.ShapeDtypeStruct((1, S, N), noise_out_dtype))
        dims = ("parallel",)
        block_elems = S * tn

        def unpack(outs):
            y = outs[0].reshape(S, B, D).transpose(1, 0, 2)
            n = (outs[1].reshape(S, B, D).transpose(1, 0, 2)
                 if need_noise_out else None)
            return y, n

    # vmem_limit derived from the real (double-buffered) footprint.
    noise_itemsize = jnp.dtype(noise_out_dtype).itemsize if need_noise_out else 0
    footprint = (2 * 2 * block_elems * itemsize        # x, ng
                 + 2 * block_elems * itemsize          # y
                 + 2 * block_elems * noise_itemsize    # correlated noise (optional)
                 + 2 * L_bytes                         # shared Cholesky factor
                 + (64 << 10))                         # alpha/std blocks + slack
    vmem_limit = int(min(vmem_cap, max(footprint + (4 << 20), 16 << 20)))
    # TODO(synk): for very large S (S^2 * itemsize comparable to VMEM) L itself would
    # need row-tiling / K-accumulation over S; not implemented here.

    kernel = functools.partial(_diffusion_kernel,
                               use_L=use_L, need_noise_out=need_noise_out)
    outs = pl.pallas_call(
        kernel,
        out_shape=tuple(out_shapes),
        grid_spec=pltpu.PrefetchScalarGridSpec(
            num_scalar_prefetch=0,
            grid=grid,
            in_specs=in_specs,
            out_specs=tuple(out_specs)),
        compiler_params=pltpu.CompilerParams(
            dimension_semantics=dims,
            vmem_limit_bytes=vmem_limit),
    )(*inputs)

    y, noise = unpack(outs)
    if predict_gaussian_noise or not use_L:
        # Second return value is bit-identical to the gaussian input; do not burn
        # HBM bandwidth writing it back out of the kernel.
        return y, noise_gaussian
    return y, noise


# --------------------------------------------------------------------------- #
# Demo / self-test
# --------------------------------------------------------------------------- #
if __name__ == "__main__":
    key = jax.random.PRNGKey(0)
    B, S, D = 2, 8, 32
    kx, ki, kn = jax.random.split(key, 3)

    x = jax.random.normal(kx, (B, S, D), dtype=jnp.float32)
    # Diffusion time: one uniform sample per batch element (as in get_loss).
    i = jax.random.uniform(ki, (B,), dtype=jnp.float32) * T1
    # torch.randn_like(x) sampled deterministically here.
    noise_gaussian = jax.random.normal(kn, (B, S, D), dtype=jnp.float32)

    # Time-series noise covariance (OU kernel) + Cholesky: parameter-setup glue.
    # TODO(synk): torch.linalg.cholesky has no clean Pallas equivalent; kept in JAX.
    t = jnp.arange(S, dtype=jnp.float32)
    cov = jnp.exp(-jnp.abs(t[:, None] - t[None, :]) / 2.0) + 1e-4 * jnp.eye(S)
    L = jnp.linalg.cholesky(cov).astype(jnp.float32)

    # Pure-JAX reference of the forward semantics.
    beta_int = beta_integral(i)[:, None, None]
    noise_ref = jnp.einsum("st,btd->bsd", L, noise_gaussian)
    mean_ref = x * jnp.exp(-beta_int / 2)
    std_ref = jnp.sqrt(jnp.maximum(1.0 - jnp.exp(-beta_int), 1e-5))
    y_ref = mean_ref + std_ref * noise_ref
    y_flat_ref = mean_ref + std_ref * noise_gaussian

    # 1) time-series (D < 128 -> transposed lane-dense layout), y only.
    y1, n1 = continuous_diffusion_forward(
        x, i, noise_gaussian, L, is_time_series=True, predict_gaussian_noise=True)
    # 2) time-series, correlated noise also emitted.
    y2, n2 = continuous_diffusion_forward(
        x, i, noise_gaussian, L, is_time_series=True, predict_gaussian_noise=False)
    # 3) non-time-series: flat elementwise path, no L input at all.
    y3, n3 = continuous_diffusion_forward(
        x, i, noise_gaussian, None, is_time_series=False, predict_gaussian_noise=True)
    jax.block_until_ready((y1, y2, n2, y3))

    assert jnp.allclose(y1, y_ref, atol=1e-5, rtol=1e-5)
    assert jnp.allclose(y2, y_ref, atol=1e-5, rtol=1e-5)
    assert jnp.allclose(n2, noise_ref, atol=1e-5, rtol=1e-5)
    assert jnp.allclose(y3, y_flat_ref, atol=1e-5, rtol=1e-5)
    assert n1 is noise_gaussian and n3 is noise_gaussian

    # 4) time-series with D a multiple of 128 -> direct [B,S,D] layout, one MXU
    #    matmul per (batch, feature-tile) grid step.
    D2 = 128
    x4 = jax.random.normal(kx, (B, S, D2), dtype=jnp.float32)
    ng4 = jax.random.normal(kn, (B, S, D2), dtype=jnp.float32)
    y4, _ = continuous_diffusion_forward(
        x4, i, ng4, L, is_time_series=True, predict_gaussian_noise=True)
    noise4_ref = jnp.einsum("st,btd->bsd", L, ng4)
    y4_ref = x4 * jnp.exp(-beta_int / 2) + std_ref * noise4_ref
    jax.block_until_ready(y4)
    assert jnp.allclose(y4, y4_ref, atol=1e-5, rtol=1e-5)

    # 5) bf16 MXU path: looser tolerance (deliberate precision/bandwidth tradeoff).
    y5, _ = continuous_diffusion_forward(
        x, i, noise_gaussian, L, is_time_series=True, predict_gaussian_noise=True,
        matmul_in_bf16=True)
    jax.block_until_ready(y5)
    assert jnp.allclose(y5, y_ref, atol=5e-2, rtol=5e-2)

    print("KERNEL_OK")
</pallas_src>

<mosaic_0001>
module attributes {stable_mosaic.version = 11 : i64} {
  func.func @_diffusion_kernel(%arg0: i32, %arg1: memref<1x8x64xf32, #tpu.memory_space<vmem>>, %arg2: memref<1x8x64xf32, #tpu.memory_space<vmem>>, %arg3: memref<8x8xf32, #tpu.memory_space<vmem>>, %arg4: memref<1x1x64xf32, #tpu.memory_space<vmem>>, %arg5: memref<1x1x64xf32, #tpu.memory_space<vmem>>, %arg6: memref<1x8x64xf32, #tpu.memory_space<vmem>>) attributes {dimension_semantics = [#tpu.dimension_semantics<parallel>], iteration_bounds = array<i64: 1>, scalar_prefetch = 0 : i64, scratch_operands = 0 : i64, tpu.core_type = #tpu.core_type<tc>, window_params = [{transform_indices = @transform_0, window_bounds = array<i64: 1, 8, 64>}, {transform_indices = @transform_1, window_bounds = array<i64: 1, 8, 64>}, {pipeline_mode = #tpu.pipeline_mode<synchronous>, transform_indices = @transform_2, window_bounds = array<i64: 8, 8>}, {transform_indices = @transform_3, window_bounds = array<i64: 1, 1, 64>}, {transform_indices = @transform_4, window_bounds = array<i64: 1, 1, 64>}, {transform_indices = @transform_5, window_bounds = array<i64: 1, 8, 64>}]} {
    %c0 = arith.constant 0 : index
    %c0_0 = arith.constant 0 : index
    %0 = vector.load %arg3[%c0, %c0_0] : memref<8x8xf32, #tpu.memory_space<vmem>>, vector<8x8xf32>
    %c0_1 = arith.constant 0 : index
    %c0_2 = arith.constant 0 : index
    %c0_3 = arith.constant 0 : index
    %1 = vector.load %arg2[%c0_1, %c0_2, %c0_3] : memref<1x8x64xf32, #tpu.memory_space<vmem>>, vector<1x8x64xf32>
    %2 = vector.shape_cast %1 : vector<1x8x64xf32> to vector<8x64xf32>
    %cst = arith.constant dense<0.000000e+00> : vector<8x64xf32>
    %3 = tpu.matmul %0, %2, %cst {dimension_numbers = #tpu.dot_dimension_numbers<[1], [0], [0], [1], [0, 0, 1, 1], [], []>} : vector<8x8xf32>, vector<8x64xf32>, vector<8x64xf32> -> vector<8x64xf32>
    %4 = vector.shape_cast %3 : vector<8x64xf32> to vector<1x8x64xf32>
    %c0_4 = arith.constant 0 : index
    %c0_5 = arith.constant 0 : index
    %c0_6 = arith.constant 0 : index
    %5 = vector.load %arg1[%c0_4, %c0_5, %c0_6] : memref<1x8x64xf32, #tpu.memory_space<vmem>>, vector<1x8x64xf32>
    %c0_7 = arith.constant 0 : index
    %c0_8 = arith.constant 0 : index
    %c0_9 = arith.constant 0 : index
    %6 = vector.load %arg4[%c0_7, %c0_8, %c0_9] : memref<1x1x64xf32, #tpu.memory_space<vmem>>, vector<1x1x64xf32>
    %7 = vector.broadcast %6 : vector<1x1x64xf32> to vector<1x8x64xf32>
    %8 = arith.mulf %5, %7 : vector<1x8x64xf32>
    %c0_10 = arith.constant 0 : index
    %c0_11 = arith.constant 0 : index
    %c0_12 = arith.constant 0 : index
    %9 = vector.load %arg5[%c0_10, %c0_11, %c0_12] : memref<1x1x64xf32, #tpu.memory_space<vmem>>, vector<1x1x64xf32>
    %10 = vector.broadcast %9 : vector<1x1x64xf32> to vector<1x8x64xf32>
    %11 = arith.mulf %10, %4 : vector<1x8x64xf32>
    %12 = arith.addf %8, %11 : vector<1x8x64xf32>
    %c0_13 = arith.constant 0 : index
    %c0_14 = arith.constant 0 : index
    %c0_15 = arith.constant 0 : index
    %13 = vector.load %arg6[%c0_13, %c0_14, %c0_15] : memref<1x8x64xf32, #tpu.memory_space<vmem>>, vector<1x8x64xf32>
    tpu.vector_store %arg6[%c0_13, %c0_14, %c0_15], %12 {strides = array<i32>} : memref<1x8x64xf32, #tpu.memory_space<vmem>>, vector<1x8x64xf32>,
    return
  }
  func.func @transform_0(%arg0: i32) -> (i32, i32, i32) {
    %c0_i32 = arith.constant 0 : i32
    %c0_i32_0 = arith.constant 0 : i32
    %c0_i32_1 = arith.constant 0 : i32
    return %c0_i32, %c0_i32_0, %arg0 : i32, i32, i32
  }
  func.func @transform_1(%arg0: i32) -> (i32, i32, i32) {
    %c0_i32 = arith.constant 0 : i32
    %c0_i32_0 = arith.constant 0 : i32
    %c0_i32_1 = arith.constant 0 : i32
    return %c0_i32, %c0_i32_0, %arg0 : i32, i32, i32
  }
  func.func @transform_2(%arg0: i32) -> (i32, i32) {
    %c0_i32 = arith.constant 0 : i32
    %c0_i32_0 = arith.constant 0 : i32
    %c0_i32_1 = arith.constant 0 : i32
    return %c0_i32, %c0_i32_0 : i32, i32
  }
  func.func @transform_3(%arg0: i32) -> (i32, i32, i32) {
    %c0_i32 = arith.constant 0 : i32
    %c0_i32_0 = arith.constant 0 : i32
    %c0_i32_1 = arith.constant 0 : i32
    return %c0_i32, %c0_i32_0, %arg0 : i32, i32, i32
  }
  func.func @transform_4(%arg0: i32) -> (i32, i32, i32) {
    %c0_i32 = arith.constant 0 : i32
    %c0_i32_0 = arith.constant 0 : i32
    %c0_i32_1 = arith.constant 0 : i32
    return %c0_i32, %c0_i32_0, %arg0 : i32, i32, i32
  }
  func.func @transform_5(%arg0: i32) -> (i32, i32, i32) {
    %c0_i32 = arith.constant 0 : i32
    %c0_i32_0 = arith.constant 0 : i32
    %c0_i32_1 = arith.constant 0 : i32
    return %c0_i32, %c0_i32_0, %arg0 : i32, i32, i32
  }
}

</mosaic_0001>

<bundles_post_ra>
// kernel: tpu_custom_call.1
= control target key start
LH: loop header
LB: loop body
LE: loop exit
PB: predicated region body
PF: predicated region fallthrough
CT: control target
= control target key end

     0   :  { %10 = vsyncpa [#allocation3], 0  ;;  %s324_s0 = inlined_call_operand.hbm [shape: f32[1,8,64], index: 0, kind: input, shape index: {}]   ;;  %s325_s1 = inlined_call_operand.hbm [shape: f32[1,8,64], index: 1, kind: input, shape index: {}]   ;;  %s326_s2 = inlined_call_operand.hbm [shape: f32[8,8], index: 2, kind: input, shape index: {}]   ;;  %s327_s3 = inlined_call_operand.vmem [shape: f32[1,1,64], index: 3, kind: input, shape index: {}]   ;;  %s328_s4 = inlined_call_operand.vmem [shape: f32[1,1,64], index: 4, kind: input, shape index: {}]   ;;  %s329_s5 = inlined_call_operand.hbm [shape: f32[1,8,64], index: 5, kind: output, shape index: {}]  }
   0x1   :  { %11 = vsyncpa [#allocation6], 0 }
   0x2   :  { %12 = vsyncpa [#allocation4], 0  ;;  %s270_s18 = smov [#allocation5]   ;;  %s271_s20 = smov [#allocation2]  }
   0x3   :  { %s29_s19 = sshll.u32 %s270_s18, 4  ;;  %s19_s21 = sshll.u32 %s271_s20, 4  ;;  %s30_s19 = int_to_ptr.vmem [resolvable:$true] %s29_s19  ;;  %s20_s21 = int_to_ptr.vmem [resolvable:$true] %s19_s21 }
   0x4   :  { %s192_s22 = scalar_lea.vmem %s30_s19, 128  ;;  %p197_p1 = scmp.lt.s32.totalorder %s30_s19, %s30_s19 }
   0x5   :  { %p193_p0 = scmp.ne.s32.totalorder %s30_s19, %s192_s22  ;;  %p198_p2 = scmp.lt.s32.totalorder %s192_s22, %s192_s22 }
   0x7   :  { %p199_p3 = por %p198_p2, %p197_p1 }
   0x9   :  { %p200_p4 = pnand %p199_p3, %p193_p0 }
   0xb   :  { %203 = shalt.err (!%p200_p4)
}
   0xc   :  { %32 = dma.hbm_to_vmem [thread:$0]  %s325_s1, 128, %s30_s19, [#allocation6]  }
   0xd   :  { %s212_s25 = scalar_lea.vmem %s20_s21, 128  ;;  %p217_p6 = scmp.lt.s32.totalorder %s20_s21, %s20_s21 }
   0xe   :  { %p213_p5 = scmp.ne.s32.totalorder %s20_s21, %s212_s25  ;;  %p218_p7 = scmp.lt.s32.totalorder %s212_s25, %s212_s25 }
  0x10   :  { %p219_p8 = por %p218_p7, %p217_p6 }
  0x12   :  { %p220_p9 = pnand %p219_p8, %p213_p5 }
  0x14   :  { %223 = shalt.err (!%p220_p9)
}
  0x15   :  { %22 = dma.hbm_to_vmem [thread:$0]  %s324_s0, 128, %s20_s21, [#allocation3]  }
  0x16   :  { %s272_s28 = smov [#allocation7]  }
  0x17   :  { %s39_s29 = sshll.u32 %s272_s28, 4  ;;  %s40_s29 = int_to_ptr.vmem [resolvable:$true] %s39_s29 }
  0x18   :  { %s232_s30 = scalar_lea.vmem %s40_s29, 128  ;;  %p237_p11 = scmp.lt.s32.totalorder %s40_s29, %s40_s29 }
  0x19   :  { %p233_p10 = scmp.ne.s32.totalorder %s40_s29, %s232_s30  ;;  %p238_p12 = scmp.lt.s32.totalorder %s232_s30, %s232_s30 }
  0x1b   :  { %p239_p13 = por %p238_p12, %p237_p11 }
  0x1d   :  { %p240_p0 = pnand %p239_p13, %p233_p10 }
  0x1f   :  { %243 = shalt.err (!%p240_p0)
}
  0x20   :  { %42 = dma.hbm_to_vmem [thread:$0]  %s326_s2, 128, %s40_s29, [#allocation6]  }
  0x21   :  { %264 = dma.done.wait [#allocation3], 128  }
  0x22   :  { %265 = vsyncadd [#allocation3], 4294967168 }
  0x23   :  { %266 = dma.done.wait [#allocation6], 256  }
  0x24   :  { %267 = vsyncadd [#allocation6], 4294967040  ;;  %v273_v0 = vmov 0.0   ;;  %vm274_vm0 = vmmov 0   ;;  %vm58_vm1 = vcmask 64512   ;;  %v57_v1 = vld [vmem:[#allocation5] sm:$0xff] }
  0x25   :  { %173 = vmatprep.subr.mxu0 %v273_v0  ;;  %175 = vmatprep.mubr.msk.f32.mxu0 %vm274_vm0, %v273_v0  ;;  %v56_v2 = vld [vmem:[#allocation7] sm:$0xff]  ;;  %v132_v3 = vld [vmem:[#allocation2] sm:$0xff]  ;;  %s275_s9 = smov [#allocation8]   ;;  %vm150_vm2 = vcmask 523264  }
  0x26   :  { %174 = vmatpush3.msra.mxu0 %v57_v1  ;;  %v169_v4 = vld [vmem:[%s327_s3] ss:$0 sm:$0xff]  ;;  %s158_s10 = sshll.u32 %s275_s9, 4  ;;  %s159_s10 = int_to_ptr.vmem [resolvable:$true] %s158_s10 }
  0x27   :  { %176 = vmatmul.mubr.msk.f32.vlgmr.msra.gmra.mxu0 %vm58_vm1, %v56_v2  ;;  %v170_v5 = vld [vmem:[%s328_s4] ss:$0 sm:$0xff]  ;;  %v140_v6 = vmul.f32 %v169_v4, %v132_v3  ;;  %s244_s11 = scalar_lea.vmem %s159_s10, 128  ;;  %p249_p2 = scmp.lt.s32.totalorder %s159_s10, %s159_s10 }
  0x28   :  { %p245_p1 = scmp.ne.s32.totalorder %s159_s10, %s244_s11  ;;  %p250_p3 = scmp.lt.s32.totalorder %s244_s11, %s244_s11 }
  0x2a   :  { %p251_p4 = por %p250_p3, %p249_p2 }
  0x2c   :  { %p252_p5 = pnand %p251_p4, %p245_p1 }
  0xe7   :  { %v128_v7 = vpop.f32.mrf.mxu0 }
  0xe8   :  { %v148_v8 = vmul.f32 %v170_v5, %v128_v7 }
  0xe9   :  { %v177_v9 = vpop.f32.mrf.mxu0 }
  0xea   :  { %v149_v10 = vadd.f32 %v148_v8, %v140_v6 }
  0xec   :  { %151 = vst.msk [vmem:[#allocation8] sm:$0xff] %vm150_vm2, %v149_v10 }
  0xed   :  { %255 = shalt.err (!%p252_p5)
}
  0xee   :  { %161 = dma.vmem_to_hbm [thread:$0]  %s159_s10, 128, %s329_s5, [#allocation4]  }
  0xef   :  { %268 = dma.done.wait [#allocation4], 128  }
  0xf0   :  { %269 = vsyncadd [#allocation4], 4294967168 }
  0xf1   :  { %165 = vsyncpa [#allocation3], 1 }
  0xf2   :  { %166 = vsyncpa [#allocation6], 1 }
  0xf3   :  { %167 = vsyncpa [#allocation4], 1 }

</bundles_post_ra>
